<compile_context>
chip_gen: v5e
topology: v5e:2x2
jax: 0.10.0
libtpu: 0.0.40
codegen_flags: <defaults>
</compile_context>

<pallas_src>
import math
import functools

import jax
import jax.numpy as jnp
from jax.experimental import pallas as pl
from jax.experimental.pallas import tpu as pltpu


# bf16 matmul inputs (f32 accumulation). Set to jnp.float32 for bit-exactness
# with the PyTorch reference (small numerical deviation expected with bf16).
MATMUL_DTYPE = jnp.bfloat16

# Explicit scoped-VMEM budget (raises v5e's 16 MiB default, safe on v7x).
VMEM_LIMIT_BYTES = 32 * 1024 * 1024


# ----------------------------- in-kernel helpers -----------------------------

def _dot(a, b):
    return jnp.dot(a.astype(MATMUL_DTYPE), b.astype(MATMUL_DTYPE),
                   preferred_element_type=jnp.float32)


def _dot_nt(a, b):
    # a @ b.T without materializing the transpose (contract feature axes).
    return jax.lax.dot_general(
        a.astype(MATMUL_DTYPE), b.astype(MATMUL_DTYPE),
        (((1,), (1,)), ((), ())), preferred_element_type=jnp.float32)


def _layernorm(x, gamma, beta):
    # PyTorch LayerNorm semantics: biased variance, eps=1e-5 inside rsqrt.
    mean = jnp.mean(x, axis=-1, keepdims=True)
    var = jnp.mean((x - mean) ** 2, axis=-1, keepdims=True)
    return (x - mean) * jax.lax.rsqrt(var + 1e-5) * gamma + beta


def _gelu_tanh(y):
    # Matches GPT2Block.gelu exactly (y*y*y instead of pow).
    c = math.sqrt(2.0 / math.pi)
    return 0.5 * y * (1.0 + jnp.tanh(c * (y + 0.044715 * (y * y * y))))


def _pick_tile(dim, target, align):
    """Largest tile <= target that is the full dim or an `align` multiple
    evenly dividing dim (keeps blocks (8,128)-legal, no padding)."""
    if dim <= target:
        return dim
    t = (target // align) * align
    while t >= align:
        if dim % t == 0:
            return t
        t -= align
    return dim


# ----------------------------- Pallas kernels -----------------------------

def _attn_block_kernel(num_head, head_sz,
                       x_ref, lng_ref, lnb_ref, wqkv_ref, bqkv_ref,
                       outw_ref, outb_ref, o_ref, kv_ref):
    """Fused: LN -> one big QKV matmul (inp_linear pre-folded) -> per-head
    causal softmax -> PV -> one out_linear matmul -> +residual.
    K/V written lane-dense into the cache output from inside the kernel."""
    x = x_ref[0]                                             # (S, D) f32
    xn = _layernorm(x, lng_ref[...], lnb_ref[...])           # PE_layer_norm

    seq = x.shape[0]
    nh_h = num_head * head_sz

    # One (S, D) x (D, 3*nh*H) matmul for every head's Q, K and V.
    qkv = _dot(xn, wqkv_ref[...]) + bqkv_ref[...]            # (S, 3*nh*H) f32

    # Causal additive bias (diagonal always unmasked -> no NaN rows).
    row = jax.lax.broadcasted_iota(jnp.int32, (seq, seq), 0)
    col = jax.lax.broadcasted_iota(jnp.int32, (seq, seq), 1)
    neg_bias = jnp.where(col > row, -jnp.inf, 0.0).astype(jnp.float32)

    f_heads, k_heads, v_heads = [], [], []
    for h in range(num_head):                                # static head loop
        lo = h * head_sz
        q = qkv[:, lo:lo + head_sz]
        k = qkv[:, nh_h + lo:nh_h + lo + head_sz]
        v = qkv[:, 2 * nh_h + lo:2 * nh_h + lo + head_sz]
        s = _dot_nt(q, k) + neg_bias                         # (S, S) scores
        m = jnp.max(s, axis=-1, keepdims=True)
        p = jnp.exp(s - m)
        p = p * pl.reciprocal(jnp.sum(p, axis=-1, keepdims=True), approx=True)
        f_heads.append(_dot(p, v))                           # (S, H)
        k_heads.append(k)
        v_heads.append(v)

    f_all = jnp.concatenate(f_heads, axis=-1)                # (S, nh*H)
    o_ref[0] = _dot(f_all, outw_ref[...]) + outb_ref[...] + x

    # Lane-dense KV-cache writeback (last dim nh*H).
    kv_ref[0, 0] = jnp.concatenate(k_heads, axis=-1)
    kv_ref[1, 0] = jnp.concatenate(v_heads, axis=-1)


def _mlp_kernel(x_ref, w1_ref, b1_ref, w2_ref, b2_ref, o_ref):
    # out = gelu(x @ w1 + b1) @ w2 + b2 + x   (residual fused)
    x = x_ref[...]
    h = _dot(x, w1_ref[...]) + b1_ref[...]
    g = _gelu_tanh(h)
    o_ref[...] = _dot(g, w2_ref[...]) + b2_ref[...] + x


def _lm_head_kernel(x_ref, g_ref, b_ref, w_ref, tb_ref, o_ref):
    # out = LayerNorm(x) @ W_vocab + b_vocab (final LN fused; LN cost per tile
    # is negligible vs the matmul with lane-dense vocab tiles).
    xn = _layernorm(x_ref[...], g_ref[...], b_ref[...])
    o_ref[...] = _dot(xn, w_ref[...]) + tb_ref[...]


# ----------------------------- kernel wrappers -----------------------------

def attention_block(x, blk, num_head):
    """x: (B, S, D). Returns (x_out (B,S,D), kv (num_head, 2, B, S, H))."""
    B, S, D = x.shape
    nh_h = blk["out_w"].shape[0]
    H = nh_h // num_head

    kernel = functools.partial(_attn_block_kernel, num_head, H)
    x_out, kv = pl.pallas_call(
        kernel,
        grid=(B,),
        out_shape=(
            jax.ShapeDtypeStruct((B, S, D), jnp.float32),
            jax.ShapeDtypeStruct((2, B, S, nh_h), jnp.float32),
        ),
        in_specs=[
            pl.BlockSpec((1, S, D), lambda b: (b, 0, 0)),
            pl.BlockSpec((1, D), lambda b: (0, 0)),
            pl.BlockSpec((1, D), lambda b: (0, 0)),
            pl.BlockSpec((D, 3 * nh_h), lambda b: (0, 0)),
            pl.BlockSpec((1, 3 * nh_h), lambda b: (0, 0)),
            pl.BlockSpec((nh_h, D), lambda b: (0, 0)),
            pl.BlockSpec((1, D), lambda b: (0, 0)),
        ],
        out_specs=(
            pl.BlockSpec((1, S, D), lambda b: (b, 0, 0)),
            pl.BlockSpec((2, 1, S, nh_h), lambda b: (0, b, 0, 0)),
        ),
        compiler_params=pltpu.CompilerParams(
            dimension_semantics=("parallel",),
            vmem_limit_bytes=VMEM_LIMIT_BYTES),
    )(x, blk["ln_g"], blk["ln_b"], blk["w_qkv"], blk["b_qkv"],
      blk["out_w"], blk["out_b"])

    # Lane-dense (2, B, S, nh*H) -> reference layout (nh, 2, B, S, H); cheap
    # XLA glue outside the kernel.
    kv = jnp.transpose(kv.reshape(2, B, S, num_head, H), (3, 0, 1, 2, 4))
    return x_out, kv


def mlp_block(x, blk):
    """Fused fc1 -> tanh-gelu -> fc2 -> residual, tiled over row tiles."""
    B, S, D = x.shape
    Hm = blk["fc1_w"].shape[1]
    x2 = x.reshape(B * S, D)
    M = B * S
    tm = _pick_tile(M, 512, 8)
    out = pl.pallas_call(
        _mlp_kernel,
        grid=(M // tm,),
        out_shape=jax.ShapeDtypeStruct((M, D), jnp.float32),
        in_specs=[
            pl.BlockSpec((tm, D), lambda i: (i, 0)),
            pl.BlockSpec((D, Hm), lambda i: (0, 0)),
            pl.BlockSpec((1, Hm), lambda i: (0, 0)),
            pl.BlockSpec((Hm, D), lambda i: (0, 0)),
            pl.BlockSpec((1, D), lambda i: (0, 0)),
        ],
        out_specs=pl.BlockSpec((tm, D), lambda i: (i, 0)),
        compiler_params=pltpu.CompilerParams(
            dimension_semantics=("parallel",),
            vmem_limit_bytes=VMEM_LIMIT_BYTES),
    )(x2, blk["fc1_w"], blk["fc1_b"], blk["fc2_w"], blk["fc2_b"])
    return out.reshape(B, S, D)


def lm_head(x, params):
    """Final LayerNorm fused into the vocab projection.
    Grid is vocab-OUTER / rows-inner so each (D, tn) vocab-weight tile is
    DMA'd exactly once (inner steps reuse it); activations re-stream instead."""
    B, S, D = x.shape
    V = params["tw"].shape[1]
    x2 = x.reshape(B * S, D)
    M = B * S
    tm = _pick_tile(M, 512, 8)
    tn = _pick_tile(V, 512, 128)          # lane-dense, 128-aligned vocab tiles
    out = pl.pallas_call(
        _lm_head_kernel,
        grid=(V // tn, M // tm),
        out_shape=jax.ShapeDtypeStruct((M, V), jnp.float32),
        in_specs=[
            pl.BlockSpec((tm, D), lambda j, i: (i, 0)),
            pl.BlockSpec((1, D), lambda j, i: (0, 0)),
            pl.BlockSpec((1, D), lambda j, i: (0, 0)),
            pl.BlockSpec((D, tn), lambda j, i: (0, j)),
            pl.BlockSpec((1, tn), lambda j, i: (0, j)),
        ],
        out_specs=pl.BlockSpec((tm, tn), lambda j, i: (i, j)),
        compiler_params=pltpu.CompilerParams(
            dimension_semantics=("parallel", "parallel"),
            vmem_limit_bytes=VMEM_LIMIT_BYTES),
    )(x2, params["tln_g"], params["tln_b"], params["tw"], params["tb"])
    return out.reshape(B, S, V)


# ----------------------------- params -----------------------------

def init_params(key, input_sz, vocab_size, num_block, num_head):
    """Raw parameters matching the PyTorch module layout, ~U(-0.1, 0.1)
    (GPT2.init_weights)."""
    stdv = 0.1
    keys = iter(jax.random.split(key, 5 + 13 * num_block))

    def u(shape):
        return jax.random.uniform(next(keys), shape, jnp.float32, -stdv, stdv)

    D = input_sz
    H = input_sz          # GPT2 builds GPT2Block(input_sz, input_sz, num_head)
    params = {
        "embedding": u((vocab_size, D)),
        "tln_g": u((D,)), "tln_b": u((D,)),
        "tw": u((D, vocab_size)), "tb": u((vocab_size,)),
        "blocks": [],
    }
    for _ in range(num_block):
        params["blocks"].append({
            "ln_g": u((D,)), "ln_b": u((D,)),
            "in_w": u((num_head, D, D)), "in_b": u((num_head, D)),
            "wq": u((num_head, D, H)), "wk": u((num_head, D, H)),
            "wv": u((num_head, D, H)),
            "out_w": u((num_head * H, D)), "out_b": u((D,)),
            "fc1_w": u((D, H)), "fc1_b": u((H,)),
            "fc2_w": u((H, D)), "fc2_b": u((D,)),
        })
    return params


def pack_params(params):
    """Algebraically fold inp_linear into Q/K/V (exact in f32):
       Q_h = (xn @ in_w_h + in_b_h) @ wq_h = xn @ (in_w_h @ wq_h) + in_b_h @ wq_h
    and pack all heads into one (D, 3*nh*H) matmul weight. Matmul weights are
    stored in MATMUL_DTYPE (halves weight DMA bytes when bf16)."""
    D = params["embedding"].shape[1]
    V = params["tw"].shape[1]
    packed = {
        "embedding": params["embedding"],
        "tln_g": params["tln_g"].reshape(1, D),
        "tln_b": params["tln_b"].reshape(1, D),
        "tw": params["tw"].astype(MATMUL_DTYPE),
        "tb": params["tb"].reshape(1, V),
        "blocks": [],
    }
    for blk in params["blocks"]:
        nh, _, H = blk["wq"].shape
        Hm = blk["fc1_w"].shape[1]

        def fold_w(w):   # (nh, D, H) -> (D, nh*H), head-major along lanes
            return jnp.einsum("hdk,hko->dho", blk["in_w"], w).reshape(D, nh * H)

        def fold_b(w):   # -> (nh*H,)
            return jnp.einsum("hk,hko->ho", blk["in_b"], w).reshape(nh * H)

        w_qkv = jnp.concatenate(
            [fold_w(blk["wq"]), fold_w(blk["wk"]), fold_w(blk["wv"])], axis=1)
        b_qkv = jnp.concatenate(
            [fold_b(blk["wq"]), fold_b(blk["wk"]), fold_b(blk["wv"])], axis=0)

        packed["blocks"].append({
            "ln_g": blk["ln_g"].reshape(1, D),
            "ln_b": blk["ln_b"].reshape(1, D),
            "w_qkv": w_qkv.astype(MATMUL_DTYPE),
            "b_qkv": b_qkv.reshape(1, 3 * nh * H),
            "out_w": blk["out_w"].astype(MATMUL_DTYPE),
            "out_b": blk["out_b"].reshape(1, D),
            "fc1_w": blk["fc1_w"].astype(MATMUL_DTYPE),
            "fc1_b": blk["fc1_b"].reshape(1, Hm),
            "fc2_w": blk["fc2_w"].astype(MATMUL_DTYPE),
            "fc2_b": blk["fc2_b"].reshape(1, D),
        })
    return packed


# ----------------------------- forward -----------------------------

def gpt2_forward(params, tokens, num_head):
    """tokens: (B, S) int32 ->
       (logits (B, S, vocab), kv_caches (num_block, num_head, 2, B, S, H))."""
    emb = params["embedding"][tokens]                       # gather: JAX glue
    B, S, D = emb.shape

    # Positional encoding: prefill branch of GPT2.positional_encoding
    # (reference uses 10000 ** (i / D) per channel, sin for even i, cos odd).
    pos = jnp.arange(S, dtype=jnp.float32)[:, None]
    idx = jnp.arange(D, dtype=jnp.float32)[None, :]
    angle = pos / jnp.power(10000.0, idx / D)
    pe = jnp.where((jnp.arange(D) % 2 == 0)[None, :], jnp.sin(angle), jnp.cos(angle))
    x = emb + pe[None, :, :]

    caches = []
    for blk in params["blocks"]:
        x, kv = attention_block(x, blk, num_head)  # LN+MHA+out_linear+residual
        x = mlp_block(x, blk)                      # fc1+gelu+fc2+residual
        caches.append(kv)
    kv_caches = jnp.stack(caches)                  # (num_block, nh, 2, B, S, H)
    logits = lm_head(x, params)                    # final LN fused into matmul
    return logits, kv_caches


# ----------------------------- demo / smoke test -----------------------------

if __name__ == "__main__":
    INPUT_SZ = 32      # model width (input_sz == per-head hidden_sz)
    VOCAB = 64
    NUM_BLOCK = 2
    NUM_HEAD = 2
    BATCH = 2
    SEQ = 8

    key = jax.random.PRNGKey(0)
    pkey, tkey = jax.random.split(key)
    raw_params = init_params(pkey, INPUT_SZ, VOCAB, NUM_BLOCK, NUM_HEAD)
    params = pack_params(raw_params)
    tokens = jax.random.randint(tkey, (BATCH, SEQ), 0, VOCAB, dtype=jnp.int32)

    fwd = jax.jit(lambda p, t: gpt2_forward(p, t, NUM_HEAD))
    logits, kv_caches = fwd(params, tokens)
    jax.block_until_ready((logits, kv_caches))

    assert logits.shape == (BATCH, SEQ, VOCAB)
    assert kv_caches.shape == (NUM_BLOCK, NUM_HEAD, 2, BATCH, SEQ, INPUT_SZ)
    assert bool(jnp.all(jnp.isfinite(logits)))
    print("KERNEL_OK")
</pallas_src>

<mosaic_0001>
module attributes {stable_mosaic.version = 11 : i64} {
  func.func @_attn_block_kernel(%arg0: i32, %arg1: memref<1x8x32xf32, #tpu.memory_space<vmem>>, %arg2: memref<1x32xf32, #tpu.memory_space<vmem>>, %arg3: memref<1x32xf32, #tpu.memory_space<vmem>>, %arg4: memref<32x192xbf16, #tpu.memory_space<vmem>>, %arg5: memref<1x192xf32, #tpu.memory_space<vmem>>, %arg6: memref<64x32xbf16, #tpu.memory_space<vmem>>, %arg7: memref<1x32xf32, #tpu.memory_space<vmem>>, %arg8: memref<1x8x32xf32, #tpu.memory_space<vmem>>, %arg9: memref<2x1x8x64xf32, #tpu.memory_space<vmem>>) attributes {dimension_semantics = [#tpu.dimension_semantics<parallel>], iteration_bounds = array<i64: 2>, scalar_prefetch = 0 : i64, scratch_operands = 0 : i64, tpu.core_type = #tpu.core_type<tc>, window_params = [{transform_indices = @transform_0, window_bounds = array<i64: 1, 8, 32>}, {pipeline_mode = #tpu.pipeline_mode<synchronous>, transform_indices = @transform_1, window_bounds = array<i64: 1, 32>}, {pipeline_mode = #tpu.pipeline_mode<synchronous>, transform_indices = @transform_2, window_bounds = array<i64: 1, 32>}, {pipeline_mode = #tpu.pipeline_mode<synchronous>, transform_indices = @transform_3, window_bounds = array<i64: 32, 192>}, {pipeline_mode = #tpu.pipeline_mode<synchronous>, transform_indices = @transform_4, window_bounds = array<i64: 1, 192>}, {pipeline_mode = #tpu.pipeline_mode<synchronous>, transform_indices = @transform_5, window_bounds = array<i64: 64, 32>}, {pipeline_mode = #tpu.pipeline_mode<synchronous>, transform_indices = @transform_6, window_bounds = array<i64: 1, 32>}, {transform_indices = @transform_7, window_bounds = array<i64: 1, 8, 32>}, {transform_indices = @transform_8, window_bounds = array<i64: 2, 1, 8, 64>}]} {
    %c0 = arith.constant 0 : index
    %c0_0 = arith.constant 0 : index
    %c0_1 = arith.constant 0 : index
    %0 = vector.load %arg1[%c0, %c0_0, %c0_1] : memref<1x8x32xf32, #tpu.memory_space<vmem>>, vector<1x8x32xf32>
    %1 = vector.shape_cast %0 : vector<1x8x32xf32> to vector<8x32xf32>
    %c0_2 = arith.constant 0 : index
    %c0_3 = arith.constant 0 : index
    %2 = vector.load %arg2[%c0_2, %c0_3] : memref<1x32xf32, #tpu.memory_space<vmem>>, vector<1x32xf32>
    %c0_4 = arith.constant 0 : index
    %c0_5 = arith.constant 0 : index
    %3 = vector.load %arg3[%c0_4, %c0_5] : memref<1x32xf32, #tpu.memory_space<vmem>>, vector<1x32xf32>
    %cst = arith.constant dense<0.000000e+00> : vector<8xf32>
    %4 = vector.multi_reduction <add>, %1, %cst [1] : vector<8x32xf32> to vector<8xf32>
    %5 = vector.shape_cast %4 : vector<8xf32> to vector<8x1xf32>
    %cst_6 = arith.constant 3.200000e+01 : f32
    %6 = vector.broadcast %cst_6 : f32 to vector<8x1xf32>
    %7 = arith.divf %5, %6 : vector<8x1xf32>
    %8 = vector.broadcast %7 : vector<8x1xf32> to vector<8x32xf32>
    %9 = arith.subf %1, %8 : vector<8x32xf32>
    %10 = arith.mulf %9, %9 : vector<8x32xf32>
    %cst_7 = arith.constant dense<0.000000e+00> : vector<8xf32>
    %11 = vector.multi_reduction <add>, %10, %cst_7 [1] : vector<8x32xf32> to vector<8xf32>
    %12 = vector.shape_cast %11 : vector<8xf32> to vector<8x1xf32>
    %cst_8 = arith.constant 3.200000e+01 : f32
    %13 = vector.broadcast %cst_8 : f32 to vector<8x1xf32>
    %14 = arith.divf %12, %13 : vector<8x1xf32>
    %15 = vector.broadcast %7 : vector<8x1xf32> to vector<8x32xf32>
    %16 = arith.subf %1, %15 : vector<8x32xf32>
    %cst_9 = arith.constant 9.99999974E-6 : f32
    %17 = vector.broadcast %cst_9 : f32 to vector<8x1xf32>
    %18 = arith.addf %14, %17 : vector<8x1xf32>
    %19 = math.rsqrt %18 : vector<8x1xf32>
    %20 = vector.broadcast %19 : vector<8x1xf32> to vector<8x32xf32>
    %21 = arith.mulf %16, %20 : vector<8x32xf32>
    %22 = vector.broadcast %2 : vector<1x32xf32> to vector<8x32xf32>
    %23 = arith.mulf %21, %22 : vector<8x32xf32>
    %24 = vector.broadcast %3 : vector<1x32xf32> to vector<8x32xf32>
    %25 = arith.addf %23, %24 : vector<8x32xf32>
    %c0_10 = arith.constant 0 : index
    %c0_11 = arith.constant 0 : index
    %26 = vector.load %arg4[%c0_10, %c0_11] : memref<32x192xbf16, #tpu.memory_space<vmem>>, vector<32x192xbf16>
    %27 = arith.truncf %25 : vector<8x32xf32> to vector<8x32xbf16>
    %cst_12 = arith.constant dense<0.000000e+00> : vector<8x192xf32>
    %28 = tpu.matmul %27, %26, %cst_12 {dimension_numbers = #tpu.dot_dimension_numbers<[1], [0], [0], [1], [0, 0, 1, 1], [], []>} : vector<8x32xbf16>, vector<32x192xbf16>, vector<8x192xf32> -> vector<8x192xf32>
    %c0_13 = arith.constant 0 : index
    %c0_14 = arith.constant 0 : index
    %29 = vector.load %arg5[%c0_13, %c0_14] : memref<1x192xf32, #tpu.memory_space<vmem>>, vector<1x192xf32>
    %30 = vector.broadcast %29 : vector<1x192xf32> to vector<8x192xf32>
    %31 = arith.addf %28, %30 : vector<8x192xf32>
    %32 = tpu.iota {dimensions = array<i32: 0>} : vector<8x8xi32>
    %33 = tpu.iota {dimensions = array<i32: 1>} : vector<8x8xi32>
    %34 = arith.cmpi sgt, %33, %32 : vector<8x8xi32>
    %cst_15 = arith.constant 0xFF800000 : f32
    %cst_16 = arith.constant 0.000000e+00 : f32
    %35 = vector.broadcast %cst_15 : f32 to vector<8x8xf32>
    %36 = vector.broadcast %cst_16 : f32 to vector<8x8xf32>
    %37 = arith.select %34, %35, %36 : vector<8x8xi1>, vector<8x8xf32>
    %38 = vector.extract_strided_slice %31 {offsets = [0, 0], sizes = [8, 32], strides = [1, 1]} : vector<8x192xf32> to vector<8x32xf32>
    %39 = vector.extract_strided_slice %31 {offsets = [0, 64], sizes = [8, 32], strides = [1, 1]} : vector<8x192xf32> to vector<8x32xf32>
    %40 = vector.extract_strided_slice %31 {offsets = [0, 128], sizes = [8, 32], strides = [1, 1]} : vector<8x192xf32> to vector<8x32xf32>
    %41 = arith.truncf %38 : vector<8x32xf32> to vector<8x32xbf16>
    %42 = arith.truncf %39 : vector<8x32xf32> to vector<8x32xbf16>
    %cst_17 = arith.constant dense<0.000000e+00> : vector<8x8xf32>
    %43 = tpu.matmul %41, %42, %cst_17 {dimension_numbers = #tpu.dot_dimension_numbers<[1], [1], [0], [0], [0, 0, 1, 0], [], []>} : vector<8x32xbf16>, vector<8x32xbf16>, vector<8x8xf32> -> vector<8x8xf32>
    %44 = arith.addf %43, %37 : vector<8x8xf32>
    %cst_18 = arith.constant dense<0xFF800000> : vector<8xf32>
    %45 = vector.multi_reduction <maximumf>, %44, %cst_18 [1] : vector<8x8xf32> to vector<8xf32>
    %46 = vector.shape_cast %45 : vector<8xf32> to vector<8x1xf32>
    %47 = vector.broadcast %46 : vector<8x1xf32> to vector<8x8xf32>
    %48 = arith.subf %44, %47 : vector<8x8xf32>
    %49 = math.exp %48 : vector<8x8xf32>
    %cst_19 = arith.constant dense<0.000000e+00> : vector<8xf32>
    %50 = vector.multi_reduction <add>, %49, %cst_19 [1] : vector<8x8xf32> to vector<8xf32>
    %51 = vector.shape_cast %50 : vector<8xf32> to vector<8x1xf32>
    %52 = tpu.reciprocal %51 {approx = true} : vector<8x1xf32> -> vector<8x1xf32>
    %53 = vector.broadcast %52 : vector<8x1xf32> to vector<8x8xf32>
    %54 = arith.mulf %49, %53 : vector<8x8xf32>
    %55 = arith.truncf %54 : vector<8x8xf32> to vector<8x8xbf16>
    %56 = arith.truncf %40 : vector<8x32xf32> to vector<8x32xbf16>
    %cst_20 = arith.constant dense<0.000000e+00> : vector<8x32xf32>
    %57 = tpu.matmul %55, %56, %cst_20 {dimension_numbers = #tpu.dot_dimension_numbers<[1], [0], [0], [1], [0, 0, 1, 1], [], []>} : vector<8x8xbf16>, vector<8x32xbf16>, vector<8x32xf32> -> vector<8x32xf32>
    %58 = vector.extract_strided_slice %31 {offsets = [0, 32], sizes = [8, 32], strides = [1, 1]} : vector<8x192xf32> to vector<8x32xf32>
    %59 = vector.extract_strided_slice %31 {offsets = [0, 96], sizes = [8, 32], strides = [1, 1]} : vector<8x192xf32> to vector<8x32xf32>
    %60 = vector.extract_strided_slice %31 {offsets = [0, 160], sizes = [8, 32], strides = [1, 1]} : vector<8x192xf32> to vector<8x32xf32>
    %61 = arith.truncf %58 : vector<8x32xf32> to vector<8x32xbf16>
    %62 = arith.truncf %59 : vector<8x32xf32> to vector<8x32xbf16>
    %cst_21 = arith.constant dense<0.000000e+00> : vector<8x8xf32>
    %63 = tpu.matmul %61, %62, %cst_21 {dimension_numbers = #tpu.dot_dimension_numbers<[1], [1], [0], [0], [0, 0, 1, 0], [], []>} : vector<8x32xbf16>, vector<8x32xbf16>, vector<8x8xf32> -> vector<8x8xf32>
    %64 = arith.addf %63, %37 : vector<8x8xf32>
    %cst_22 = arith.constant dense<0xFF800000> : vector<8xf32>
    %65 = vector.multi_reduction <maximumf>, %64, %cst_22 [1] : vector<8x8xf32> to vector<8xf32>
    %66 = vector.shape_cast %65 : vector<8xf32> to vector<8x1xf32>
    %67 = vector.broadcast %66 : vector<8x1xf32> to vector<8x8xf32>
    %68 = arith.subf %64, %67 : vector<8x8xf32>
    %69 = math.exp %68 : vector<8x8xf32>
    %cst_23 = arith.constant dense<0.000000e+00> : vector<8xf32>
    %70 = vector.multi_reduction <add>, %69, %cst_23 [1] : vector<8x8xf32> to vector<8xf32>
    %71 = vector.shape_cast %70 : vector<8xf32> to vector<8x1xf32>
    %72 = tpu.reciprocal %71 {approx = true} : vector<8x1xf32> -> vector<8x1xf32>
    %73 = vector.broadcast %72 : vector<8x1xf32> to vector<8x8xf32>
    %74 = arith.mulf %69, %73 : vector<8x8xf32>
    %75 = arith.truncf %74 : vector<8x8xf32> to vector<8x8xbf16>
    %76 = arith.truncf %60 : vector<8x32xf32> to vector<8x32xbf16>
    %cst_24 = arith.constant dense<0.000000e+00> : vector<8x32xf32>
    %77 = tpu.matmul %75, %76, %cst_24 {dimension_numbers = #tpu.dot_dimension_numbers<[1], [0], [0], [1], [0, 0, 1, 1], [], []>} : vector<8x8xbf16>, vector<8x32xbf16>, vector<8x32xf32> -> vector<8x32xf32>
    %78 = tpu.concatenate %57, %77 in 1 : vector<8x32xf32>, vector<8x32xf32> -> vector<8x64xf32>
    %c0_25 = arith.constant 0 : index
    %c0_26 = arith.constant 0 : index
    %79 = vector.load %arg6[%c0_25, %c0_26] : memref<64x32xbf16, #tpu.memory_space<vmem>>, vector<64x32xbf16>
    %80 = arith.truncf %78 : vector<8x64xf32> to vector<8x64xbf16>
    %cst_27 = arith.constant dense<0.000000e+00> : vector<8x32xf32>
    %81 = tpu.matmul %80, %79, %cst_27 {dimension_numbers = #tpu.dot_dimension_numbers<[1], [0], [0], [1], [0, 0, 1, 1], [], []>} : vector<8x64xbf16>, vector<64x32xbf16>, vector<8x32xf32> -> vector<8x32xf32>
    %c0_28 = arith.constant 0 : index
    %c0_29 = arith.constant 0 : index
    %82 = vector.load %arg7[%c0_28, %c0_29] : memref<1x32xf32, #tpu.memory_space<vmem>>, vector<1x32xf32>
    %83 = vector.broadcast %82 : vector<1x32xf32> to vector<8x32xf32>
    %84 = arith.addf %81, %83 : vector<8x32xf32>
    %85 = arith.addf %84, %1 : vector<8x32xf32>
    %c0_30 = arith.constant 0 : index
    %c0_31 = arith.constant 0 : index
    %c0_32 = arith.constant 0 : index
    %86 = vector.load %arg8[%c0_30, %c0_31, %c0_32] : memref<1x8x32xf32, #tpu.memory_space<vmem>>, vector<1x8x32xf32>
    %87 = vector.shape_cast %86 : vector<1x8x32xf32> to vector<8x32xf32>
    %88 = vector.shape_cast %85 : vector<8x32xf32> to vector<1x8x32xf32>
    tpu.vector_store %arg8[%c0_30, %c0_31, %c0_32], %88 {strides = array<i32>} : memref<1x8x32xf32, #tpu.memory_space<vmem>>, vector<1x8x32xf32>,
    %89 = tpu.concatenate %39, %59 in 1 : vector<8x32xf32>, vector<8x32xf32> -> vector<8x64xf32>
    %c0_33 = arith.constant 0 : index
    %c0_34 = arith.constant 0 : index
    %c0_35 = arith.constant 0 : index
    %c0_36 = arith.constant 0 : index
    %90 = vector.load %arg9[%c0_33, %c0_34, %c0_35, %c0_36] : memref<2x1x8x64xf32, #tpu.memory_space<vmem>>, vector<1x1x8x64xf32>
    %91 = vector.shape_cast %90 : vector<1x1x8x64xf32> to vector<8x64xf32>
    %92 = vector.shape_cast %89 : vector<8x64xf32> to vector<1x1x8x64xf32>
    tpu.vector_store %arg9[%c0_33, %c0_34, %c0_35, %c0_36], %92 {strides = array<i32>} : memref<2x1x8x64xf32, #tpu.memory_space<vmem>>, vector<1x1x8x64xf32>,
    %93 = tpu.concatenate %40, %60 in 1 : vector<8x32xf32>, vector<8x32xf32> -> vector<8x64xf32>
    %c1 = arith.constant 1 : index
    %c0_37 = arith.constant 0 : index
    %c0_38 = arith.constant 0 : index
    %c0_39 = arith.constant 0 : index
    %94 = vector.load %arg9[%c1, %c0_37, %c0_38, %c0_39] : memref<2x1x8x64xf32, #tpu.memory_space<vmem>>, vector<1x1x8x64xf32>
    %95 = vector.shape_cast %94 : vector<1x1x8x64xf32> to vector<8x64xf32>
    %96 = vector.shape_cast %93 : vector<8x64xf32> to vector<1x1x8x64xf32>
    tpu.vector_store %arg9[%c1, %c0_37, %c0_38, %c0_39], %96 {strides = array<i32>} : memref<2x1x8x64xf32, #tpu.memory_space<vmem>>, vector<1x1x8x64xf32>,
    return
  }
  func.func @transform_0(%arg0: i32) -> (i32, i32, i32) {
    %c0_i32 = arith.constant 0 : i32
    %c0_i32_0 = arith.constant 0 : i32
    %c0_i32_1 = arith.constant 0 : i32
    return %arg0, %c0_i32, %c0_i32_0 : i32, i32, i32
  }
  func.func @transform_1(%arg0: i32) -> (i32, i32) {
    %c0_i32 = arith.constant 0 : i32
    %c0_i32_0 = arith.constant 0 : i32
    %c0_i32_1 = arith.constant 0 : i32
    return %c0_i32, %c0_i32_0 : i32, i32
  }
  func.func @transform_2(%arg0: i32) -> (i32, i32) {
    %c0_i32 = arith.constant 0 : i32
    %c0_i32_0 = arith.constant 0 : i32
    %c0_i32_1 = arith.constant 0 : i32
    return %c0_i32, %c0_i32_0 : i32, i32
  }
  func.func @transform_3(%arg0: i32) -> (i32, i32) {
    %c0_i32 = arith.constant 0 : i32
    %c0_i32_0 = arith.constant 0 : i32
    %c0_i32_1 = arith.constant 0 : i32
    return %c0_i32, %c0_i32_0 : i32, i32
  }
  func.func @transform_4(%arg0: i32) -> (i32, i32) {
    %c0_i32 = arith.constant 0 : i32
    %c0_i32_0 = arith.constant 0 : i32
    %c0_i32_1 = arith.constant 0 : i32
    return %c0_i32, %c0_i32_0 : i32, i32
  }
  func.func @transform_5(%arg0: i32) -> (i32, i32) {
    %c0_i32 = arith.constant 0 : i32
    %c0_i32_0 = arith.constant 0 : i32
    %c0_i32_1 = arith.constant 0 : i32
    return %c0_i32, %c0_i32_0 : i32, i32
  }
  func.func @transform_6(%arg0: i32) -> (i32, i32) {
    %c0_i32 = arith.constant 0 : i32
    %c0_i32_0 = arith.constant 0 : i32
    %c0_i32_1 = arith.constant 0 : i32
    return %c0_i32, %c0_i32_0 : i32, i32
  }
  func.func @transform_7(%arg0: i32) -> (i32, i32, i32) {
    %c0_i32 = arith.constant 0 : i32
    %c0_i32_0 = arith.constant 0 : i32
    %c0_i32_1 = arith.constant 0 : i32
    return %arg0, %c0_i32, %c0_i32_0 : i32, i32, i32
  }
  func.func @transform_8(%arg0: i32) -> (i32, i32, i32, i32) {
    %c0_i32 = arith.constant 0 : i32
    %c0_i32_0 = arith.constant 0 : i32
    %c0_i32_1 = arith.constant 0 : i32
    %c0_i32_2 = arith.constant 0 : i32
    return %c0_i32, %arg0, %c0_i32_0, %c0_i32_1 : i32, i32, i32, i32
  }
}

module attributes {stable_mosaic.version = 11 : i64} {
  func.func @_lm_head_kernel(%arg0: i32, %arg1: i32, %arg2: memref<16x32xf32, #tpu.memory_space<vmem>>, %arg3: memref<1x32xf32, #tpu.memory_space<vmem>>, %arg4: memref<1x32xf32, #tpu.memory_space<vmem>>, %arg5: memref<32x64xbf16, #tpu.memory_space<vmem>>, %arg6: memref<1x64xf32, #tpu.memory_space<vmem>>, %arg7: memref<16x64xf32, #tpu.memory_space<vmem>>) attributes {dimension_semantics = [#tpu.dimension_semantics<parallel>, #tpu.dimension_semantics<parallel>], iteration_bounds = array<i64: 1, 1>, scalar_prefetch = 0 : i64, scratch_operands = 0 : i64, tpu.core_type = #tpu.core_type<tc>, window_params = [{transform_indices = @transform_0, window_bounds = array<i64: 16, 32>}, {pipeline_mode = #tpu.pipeline_mode<synchronous>, transform_indices = @transform_1, window_bounds = array<i64: 1, 32>}, {pipeline_mode = #tpu.pipeline_mode<synchronous>, transform_indices = @transform_2, window_bounds = array<i64: 1, 32>}, {transform_indices = @transform_3, window_bounds = array<i64: 32, 64>}, {transform_indices = @transform_4, window_bounds = array<i64: 1, 64>}, {transform_indices = @transform_5, window_bounds = array<i64: 16, 64>}]} {
    %c0 = arith.constant 0 : index
    %c0_0 = arith.constant 0 : index
    %0 = vector.load %arg2[%c0, %c0_0] : memref<16x32xf32, #tpu.memory_space<vmem>>, vector<16x32xf32>
    %c0_1 = arith.constant 0 : index
    %c0_2 = arith.constant 0 : index
    %1 = vector.load %arg3[%c0_1, %c0_2] : memref<1x32xf32, #tpu.memory_space<vmem>>, vector<1x32xf32>
    %c0_3 = arith.constant 0 : index
    %c0_4 = arith.constant 0 : index
    %2 = vector.load %arg4[%c0_3, %c0_4] : memref<1x32xf32, #tpu.memory_space<vmem>>, vector<1x32xf32>
    %cst = arith.constant dense<0.000000e+00> : vector<16xf32>
    %3 = vector.multi_reduction <add>, %0, %cst [1] : vector<16x32xf32> to vector<16xf32>
    %4 = vector.shape_cast %3 : vector<16xf32> to vector<16x1xf32>
    %cst_5 = arith.constant 3.200000e+01 : f32
    %5 = vector.broadcast %cst_5 : f32 to vector<16x1xf32>
    %6 = arith.divf %4, %5 : vector<16x1xf32>
    %7 = vector.broadcast %6 : vector<16x1xf32> to vector<16x32xf32>
    %8 = arith.subf %0, %7 : vector<16x32xf32>
    %9 = arith.mulf %8, %8 : vector<16x32xf32>
    %cst_6 = arith.constant dense<0.000000e+00> : vector<16xf32>
    %10 = vector.multi_reduction <add>, %9, %cst_6 [1] : vector<16x32xf32> to vector<16xf32>
    %11 = vector.shape_cast %10 : vector<16xf32> to vector<16x1xf32>
    %cst_7 = arith.constant 3.200000e+01 : f32
    %12 = vector.broadcast %cst_7 : f32 to vector<16x1xf32>
    %13 = arith.divf %11, %12 : vector<16x1xf32>
    %14 = vector.broadcast %6 : vector<16x1xf32> to vector<16x32xf32>
    %15 = arith.subf %0, %14 : vector<16x32xf32>
    %cst_8 = arith.constant 9.99999974E-6 : f32
    %16 = vector.broadcast %cst_8 : f32 to vector<16x1xf32>
    %17 = arith.addf %13, %16 : vector<16x1xf32>
    %18 = math.rsqrt %17 : vector<16x1xf32>
    %19 = vector.broadcast %18 : vector<16x1xf32> to vector<16x32xf32>
    %20 = arith.mulf %15, %19 : vector<16x32xf32>
    %21 = vector.broadcast %1 : vector<1x32xf32> to vector<16x32xf32>
    %22 = arith.mulf %20, %21 : vector<16x32xf32>
    %23 = vector.broadcast %2 : vector<1x32xf32> to vector<16x32xf32>
    %24 = arith.addf %22, %23 : vector<16x32xf32>
    %c0_9 = arith.constant 0 : index
    %c0_10 = arith.constant 0 : index
    %25 = vector.load %arg5[%c0_9, %c0_10] : memref<32x64xbf16, #tpu.memory_space<vmem>>, vector<32x64xbf16>
    %26 = arith.truncf %24 : vector<16x32xf32> to vector<16x32xbf16>
    %cst_11 = arith.constant dense<0.000000e+00> : vector<16x64xf32>
    %27 = tpu.matmul %26, %25, %cst_11 {dimension_numbers = #tpu.dot_dimension_numbers<[1], [0], [0], [1], [0, 0, 1, 1], [], []>} : vector<16x32xbf16>, vector<32x64xbf16>, vector<16x64xf32> -> vector<16x64xf32>
    %c0_12 = arith.constant 0 : index
    %c0_13 = arith.constant 0 : index
    %28 = vector.load %arg6[%c0_12, %c0_13] : memref<1x64xf32, #tpu.memory_space<vmem>>, vector<1x64xf32>
    %29 = vector.broadcast %28 : vector<1x64xf32> to vector<16x64xf32>
    %30 = arith.addf %27, %29 : vector<16x64xf32>
    %c0_14 = arith.constant 0 : index
    %c0_15 = arith.constant 0 : index
    %31 = vector.load %arg7[%c0_14, %c0_15] : memref<16x64xf32, #tpu.memory_space<vmem>>, vector<16x64xf32>
    tpu.vector_store %arg7[%c0_14, %c0_15], %30 {strides = array<i32>} : memref<16x64xf32, #tpu.memory_space<vmem>>, vector<16x64xf32>,
    return
  }
  func.func @transform_0(%arg0: i32, %arg1: i32) -> (i32, i32) {
    %c0_i32 = arith.constant 0 : i32
    %c0_i32_0 = arith.constant 0 : i32
    return %arg1, %c0_i32 : i32, i32
  }
  func.func @transform_1(%arg0: i32, %arg1: i32) -> (i32, i32) {
    %c0_i32 = arith.constant 0 : i32
    %c0_i32_0 = arith.constant 0 : i32
    %c0_i32_1 = arith.constant 0 : i32
    return %c0_i32, %c0_i32_0 : i32, i32
  }
  func.func @transform_2(%arg0: i32, %arg1: i32) -> (i32, i32) {
    %c0_i32 = arith.constant 0 : i32
    %c0_i32_0 = arith.constant 0 : i32
    %c0_i32_1 = arith.constant 0 : i32
    return %c0_i32, %c0_i32_0 : i32, i32
  }
  func.func @transform_3(%arg0: i32, %arg1: i32) -> (i32, i32) {
    %c0_i32 = arith.constant 0 : i32
    %c0_i32_0 = arith.constant 0 : i32
    return %c0_i32, %arg0 : i32, i32
  }
  func.func @transform_4(%arg0: i32, %arg1: i32) -> (i32, i32) {
    %c0_i32 = arith.constant 0 : i32
    %c0_i32_0 = arith.constant 0 : i32
    return %c0_i32, %arg0 : i32, i32
  }
  func.func @transform_5(%arg0: i32, %arg1: i32) -> (i32, i32) {
    %c0_i32 = arith.constant 0 : i32
    return %arg1, %arg0 : i32, i32
  }
}

module attributes {stable_mosaic.version = 11 : i64} {
  func.func @_mlp_kernel(%arg0: i32, %arg1: memref<16x32xf32, #tpu.memory_space<vmem>>, %arg2: memref<32x32xbf16, #tpu.memory_space<vmem>>, %arg3: memref<1x32xf32, #tpu.memory_space<vmem>>, %arg4: memref<32x32xbf16, #tpu.memory_space<vmem>>, %arg5: memref<1x32xf32, #tpu.memory_space<vmem>>, %arg6: memref<16x32xf32, #tpu.memory_space<vmem>>) attributes {dimension_semantics = [#tpu.dimension_semantics<parallel>], iteration_bounds = array<i64: 1>, scalar_prefetch = 0 : i64, scratch_operands = 0 : i64, tpu.core_type = #tpu.core_type<tc>, window_params = [{transform_indices = @transform_0, window_bounds = array<i64: 16, 32>}, {pipeline_mode = #tpu.pipeline_mode<synchronous>, transform_indices = @transform_1, window_bounds = array<i64: 32, 32>}, {pipeline_mode = #tpu.pipeline_mode<synchronous>, transform_indices = @transform_2, window_bounds = array<i64: 1, 32>}, {pipeline_mode = #tpu.pipeline_mode<synchronous>, transform_indices = @transform_3, window_bounds = array<i64: 32, 32>}, {pipeline_mode = #tpu.pipeline_mode<synchronous>, transform_indices = @transform_4, window_bounds = array<i64: 1, 32>}, {transform_indices = @transform_5, window_bounds = array<i64: 16, 32>}]} {
    %c0 = arith.constant 0 : index
    %c0_0 = arith.constant 0 : index
    %0 = vector.load %arg1[%c0, %c0_0] : memref<16x32xf32, #tpu.memory_space<vmem>>, vector<16x32xf32>
    %c0_1 = arith.constant 0 : index
    %c0_2 = arith.constant 0 : index
    %1 = vector.load %arg2[%c0_1, %c0_2] : memref<32x32xbf16, #tpu.memory_space<vmem>>, vector<32x32xbf16>
    %2 = arith.truncf %0 : vector<16x32xf32> to vector<16x32xbf16>
    %cst = arith.constant dense<0.000000e+00> : vector<16x32xf32>
    %3 = tpu.matmul %2, %1, %cst {dimension_numbers = #tpu.dot_dimension_numbers<[1], [0], [0], [1], [0, 0, 1, 1], [], []>} : vector<16x32xbf16>, vector<32x32xbf16>, vector<16x32xf32> -> vector<16x32xf32>
    %c0_3 = arith.constant 0 : index
    %c0_4 = arith.constant 0 : index
    %4 = vector.load %arg3[%c0_3, %c0_4] : memref<1x32xf32, #tpu.memory_space<vmem>>, vector<1x32xf32>
    %5 = vector.broadcast %4 : vector<1x32xf32> to vector<16x32xf32>
    %6 = arith.addf %3, %5 : vector<16x32xf32>
    %cst_5 = arith.constant 5.000000e-01 : f32
    %7 = vector.broadcast %cst_5 : f32 to vector<16x32xf32>
    %8 = arith.mulf %7, %6 : vector<16x32xf32>
    %9 = arith.mulf %6, %6 : vector<16x32xf32>
    %10 = arith.mulf %9, %6 : vector<16x32xf32>
    %cst_6 = arith.constant 4.471500e-02 : f32
    %11 = vector.broadcast %cst_6 : f32 to vector<16x32xf32>
    %12 = arith.mulf %11, %10 : vector<16x32xf32>
    %13 = arith.addf %6, %12 : vector<16x32xf32>
    %cst_7 = arith.constant 0.797884583 : f32
    %14 = vector.broadcast %cst_7 : f32 to vector<16x32xf32>
    %15 = arith.mulf %14, %13 : vector<16x32xf32>
    %16 = math.tanh %15 : vector<16x32xf32>
    %cst_8 = arith.constant 1.000000e+00 : f32
    %17 = vector.broadcast %cst_8 : f32 to vector<16x32xf32>
    %18 = arith.addf %17, %16 : vector<16x32xf32>
    %19 = arith.mulf %8, %18 : vector<16x32xf32>
    %c0_9 = arith.constant 0 : index
    %c0_10 = arith.constant 0 : index
    %20 = vector.load %arg4[%c0_9, %c0_10] : memref<32x32xbf16, #tpu.memory_space<vmem>>, vector<32x32xbf16>
    %21 = arith.truncf %19 : vector<16x32xf32> to vector<16x32xbf16>
    %cst_11 = arith.constant dense<0.000000e+00> : vector<16x32xf32>
    %22 = tpu.matmul %21, %20, %cst_11 {dimension_numbers = #tpu.dot_dimension_numbers<[1], [0], [0], [1], [0, 0, 1, 1], [], []>} : vector<16x32xbf16>, vector<32x32xbf16>, vector<16x32xf32> -> vector<16x32xf32>
    %c0_12 = arith.constant 0 : index
    %c0_13 = arith.constant 0 : index
    %23 = vector.load %arg5[%c0_12, %c0_13] : memref<1x32xf32, #tpu.memory_space<vmem>>, vector<1x32xf32>
    %24 = vector.broadcast %23 : vector<1x32xf32> to vector<16x32xf32>
    %25 = arith.addf %22, %24 : vector<16x32xf32>
    %26 = arith.addf %25, %0 : vector<16x32xf32>
    %c0_14 = arith.constant 0 : index
    %c0_15 = arith.constant 0 : index
    %27 = vector.load %arg6[%c0_14, %c0_15] : memref<16x32xf32, #tpu.memory_space<vmem>>, vector<16x32xf32>
    tpu.vector_store %arg6[%c0_14, %c0_15], %26 {strides = array<i32>} : memref<16x32xf32, #tpu.memory_space<vmem>>, vector<16x32xf32>,
    return
  }
  func.func @transform_0(%arg0: i32) -> (i32, i32) {
    %c0_i32 = arith.constant 0 : i32
    %c0_i32_0 = arith.constant 0 : i32
    return %arg0, %c0_i32 : i32, i32
  }
  func.func @transform_1(%arg0: i32) -> (i32, i32) {
    %c0_i32 = arith.constant 0 : i32
    %c0_i32_0 = arith.constant 0 : i32
    %c0_i32_1 = arith.constant 0 : i32
    return %c0_i32, %c0_i32_0 : i32, i32
  }
  func.func @transform_2(%arg0: i32) -> (i32, i32) {
    %c0_i32 = arith.constant 0 : i32
    %c0_i32_0 = arith.constant 0 : i32
    %c0_i32_1 = arith.constant 0 : i32
    return %c0_i32, %c0_i32_0 : i32, i32
  }
  func.func @transform_3(%arg0: i32) -> (i32, i32) {
    %c0_i32 = arith.constant 0 : i32
    %c0_i32_0 = arith.constant 0 : i32
    %c0_i32_1 = arith.constant 0 : i32
    return %c0_i32, %c0_i32_0 : i32, i32
  }
  func.func @transform_4(%arg0: i32) -> (i32, i32) {
    %c0_i32 = arith.constant 0 : i32
    %c0_i32_0 = arith.constant 0 : i32
    %c0_i32_1 = arith.constant 0 : i32
    return %c0_i32, %c0_i32_0 : i32, i32
  }
  func.func @transform_5(%arg0: i32) -> (i32, i32) {
    %c0_i32 = arith.constant 0 : i32
    %c0_i32_0 = arith.constant 0 : i32
    return %arg0, %c0_i32 : i32, i32
  }
}

</mosaic_0001>

<bundles_post_ra>
// kernel: _lambda_.9
= control target key start
LH: loop header
LB: loop body
LE: loop exit
PB: predicated region body
PF: predicated region fallthrough
CT: control target
= control target key end

     0   :  { %vm26_vm0 = vcmask 261120   ;;  %s260_s0 = inlined_call_operand.vmem [shape: f32[16,32], index: 0, kind: input, shape index: {}]   ;;  %s261_s1 = inlined_call_operand.vmem [shape: f32[1,32], index: 1, kind: input, shape index: {}]   ;;  %s262_s2 = inlined_call_operand.vmem [shape: f32[1,32], index: 2, kind: input, shape index: {}]   ;;  %s263_s3 = inlined_call_operand.vmem [shape: bf16[32,64], index: 3, kind: input, shape index: {}]   ;;  %s264_s4 = inlined_call_operand.vmem [shape: f32[1,64], index: 4, kind: input, shape index: {}]   ;;  %s265_s5 = inlined_call_operand.hbm [shape: f32[16,64], index: 5, kind: output, shape index: {}]  }
   0x1   :  { %v22_v0 = vld [vmem:[%s260_s0] sm:$0xff] }
   0x2   :  { %v27_v1 = vsel %vm26_vm0, %v22_v0, 0.0 }
   0x3   :  { %28 = vadd.xlane.f32.xlu0 %v27_v1 }
   0x4   :  { %10 = vsyncpa [#allocation3], 0  ;;  %v23_v2 = vld [vmem:[%s260_s0 + $0x8] sm:$0xff]  ;;  %v197_v4 = vmov 32.0   ;;  %v156_v23 = vld [vmem:[%s263_s3] sm:$0xff]  ;;  %vm126_vm8 = vcmask 523264  }
   0x5   :  { %v30_v3 = vsel %vm26_vm0, %v23_v2, 0.0  ;;  %165 = vrcp.f32 %v197_v4  ;;  %v157_v21 = vld [vmem:[%s263_s3 + $0x8] sm:$0xff]  ;;  %v162_v42 = vld [vmem:[%s261_s1] ss:$0 sm:$0xff]  ;;  %s198_s1 = smov [#allocation2]   ;;  %s199_s8 = smov 128  }
   0x6   :  { %118 = vmatpush.bf16.msra.mxu0 %v157_v21  ;;  %v163_v47 = vld [vmem:[%s262_s2] ss:$0 sm:$0xff]  ;;  %s133_s30 = sshll.u32 %s198_s1, 4  ;;  %s135_s2 = sshll.u32 %s265_s5, 4  ;;  %s134_s30 = int_to_ptr.vmem [resolvable:$true] %s133_s30  ;;  %s136_s2 = int_to_ptr.hbm [resolvable:$true] %s135_s2 }
   0x7   :  { %v164_v52 = vld [vmem:[%s264_s4] ss:$0 sm:$0xff]  ;;  %s200_s9 = smov 8  }
   0xa   :  { %119 = vmatpush.bf16.msra.mxu0 %v156_v23 }
   0xb   :  { %31 = vadd.xlane.f32.xlu0 %v30_v3  ;;  %v166_v5 = vpop.eup %165 }
   0xc   :  { %v34_v6 = vmul.f32 32.0, %v166_v5  ;;  %vm38_vm1 = vweird.f32 %v166_v5 }
   0xe   :  { %v35_v7 = vsub.f32 1.0, %v34_v6 }
  0x10   :  { %v36_v8 = vmul.f32 %v166_v5, %v35_v7 }
  0x12   :  { %v37_v9 = vadd.f32 %v166_v5, %v36_v8 }
  0x14   :  { %v39_v10 = vsel %vm38_vm1, %v166_v5, %v37_v9 }
  0x76   :  { %v29_v11 = vpop.xlane.xlu0 %28 }
  0x77   :  { %v40_v12 = vmul.f32 %v39_v10, %v29_v11 }
  0x79   :  { %v42_v13 = vsub.f32 %v22_v0, %v40_v12 }
  0x7b   :  { %v44_v14 = vmul.f32 %v42_v13, %v42_v13 }
  0x7d   :  { %v46_v15 = vsel %vm26_vm0, %v44_v14, 0.0 }
  0x7e   :  { %47 = vadd.xlane.f32.xlu1 %v46_v15  ;;  %v32_v16 = vpop.xlane.xlu0 %31 }
  0x7f   :  { %v41_v17 = vmul.f32 %v39_v10, %v32_v16 }
  0x81   :  { %v43_v18 = vsub.f32 %v23_v2, %v41_v17 }
  0x83   :  { %v45_v19 = vmul.f32 %v43_v18, %v43_v18 }
  0x85   :  { %v49_v20 = vsel %vm26_vm0, %v45_v19, 0.0 }
  0x86   :  { %50 = vadd.xlane.f32.xlu1 %v49_v20 }
  0xf1   :  { %v48_v22 = vpop.xlane.xlu1 %47 }
  0xf2   :  { %v52_v24 = vmul.f32 %v48_v22, %v39_v10 }
  0xf4   :  { %v54_v25 = vadd.f32 1e-05, %v52_v24 }
  0xf6   :  { %167 = vrsqrt.f32 %v54_v25  ;;  %vm62_vm3 = vweird.f32 %v54_v25 }
  0xf9   :  { %v51_v26 = vpop.xlane.xlu1 %50 }
  0xfa   :  { %v53_v27 = vmul.f32 %v51_v26, %v39_v10 }
  0xfc   :  { %v168_v28 = vpop.eup %167  ;;  %v55_v29 = vadd.f32 1e-05, %v53_v27 }
  0xfd   :  { %v57_v30 = vmul.f32 %v168_v28, %v54_v25  ;;  %vm63_vm2 = vweird.f32 %v168_v28 }
  0xfe   :  { %169 = vrsqrt.f32 %v55_v29  ;;  %vm64_vm4 = vmor %vm62_vm3, %vm63_vm2  ;;  %vm72_vm6 = vweird.f32 %v55_v29 }
  0xff   :  { %v58_v31 = vmul.f32 %v168_v28, %v57_v30 }
 0x101   :  { %v59_v32 = vmul.f32 0.5, %v58_v31 }
 0x103   :  { %v60_v33 = vsub.f32 1.5, %v59_v32 }
 0x104   :  { %v170_v34 = vpop.eup %169 }
 0x105   :  { %v61_v35 = vmul.f32 %v168_v28, %v60_v33  ;;  %v67_v36 = vmul.f32 %v170_v34, %v55_v29  ;;  %vm73_vm5 = vweird.f32 %v170_v34 }
 0x106   :  { %vm74_vm7 = vmor %vm72_vm6, %vm73_vm5 }
 0x107   :  { %v68_v37 = vmul.f32 %v170_v34, %v67_v36  ;;  %v65_v38 = vsel %vm64_vm4, %v168_v28, %v61_v35 }
 0x108   :  { %v76_v41 = vmul.f32 %v65_v38, %v42_v13 }
 0x109   :  { %v69_v39 = vmul.f32 0.5, %v68_v37 }
 0x10a   :  { %v81_v46 = vmul.f32 %v162_v42, %v76_v41 }
 0x10b   :  { %v70_v40 = vsub.f32 1.5, %v69_v39 }
 0x10c   :  { %v86_v49 = vadd.f32 %v163_v47, %v81_v46 }
 0x10d   :  { %v71_v43 = vmul.f32 %v170_v34, %v70_v40 }
 0x10f   :  { %v75_v44 = vsel %vm74_vm7, %v170_v34, %v71_v43 }
 0x110   :  { %v77_v45 = vmul.f32 %v75_v44, %v43_v18 }
 0x112   :  { %v82_v48 = vmul.f32 %v162_v42, %v77_v45 }
 0x114   :  { %v87_v50 = vadd.f32 %v163_v47, %v82_v48 }
 0x116   :  { %v92_v51 = vpack.c.bf16 %v87_v50, %v86_v49 }
 0x118   :  { %155 = vmatmul.msk.bf16.vlgmr.msra.gmra.mxu0 %vm26_vm0, %v92_v51 }
 0x195   :  { %v121_v53 = vpop.f32.mrf.mxu0 }
 0x196   :  { %v122_v54 = vadd.f32 %v164_v52, %v121_v53 }
 0x198   :  { %127 = vst.msk [vmem:[#allocation2] sm:$0xff] %vm126_vm8, %v122_v54 }
 0x19d   :  { %v123_v55 = vpop.f32.mrf.mxu0 }
 0x19e   :  { %v124_v56 = vadd.f32 %v164_v52, %v123_v55 }
 0x1a0   :  { %128 = vst.msk [vmem:[#allocation2 + $0x8] sm:$0xff] %vm126_vm8, %v124_v56 }
 0x1a1   :  { %141 = dma.vmem_to_hbm [thread:$0]  %s134_s30, 256, %s136_s2, [#allocation3], %s199_s8, %s199_s8, %s200_s9  }
 0x1a2   :  { %195 = dma.done.wait [#allocation3], 256  }
 0x1a3   :  { %196 = vsyncadd [#allocation3], 4294967040 }
 0x1a4   :  { %146 = vsyncpa [#allocation3], 1 }

// kernel: _lambda_.6
= control target key start
LH: loop header
LB: loop body
LE: loop exit
PB: predicated region body
PF: predicated region fallthrough
CT: control target
= control target key end

     0   :  { %vm44_vm0 = vcmask 261120   ;;  %s218_s1 = inlined_call_operand.vmem [shape: bf16[32,32], index: 1, kind: input, shape index: {}]   ;;  %s219_s0 = inlined_call_operand.vmem [shape: f32[16,32], index: 0, kind: input, shape index: {}]   ;;  %s220_s2 = inlined_call_operand.vmem [shape: f32[1,32], index: 2, kind: input, shape index: {}]   ;;  %s221_s4 = inlined_call_operand.vmem [shape: f32[1,32], index: 4, kind: input, shape index: {}]   ;;  %s222_s3 = inlined_call_operand.vmem [shape: bf16[32,32], index: 3, kind: input, shape index: {}]   ;;  %s223_s5 = inlined_call_operand.vmem [shape: f32[16,32], index: 5, kind: output, shape index: {}]  }
   0x1   :  { %v145_v0 = vld [vmem:[%s218_s1 + $0x8] sm:$0xff]  ;;  %v144_v1 = vld [vmem:[%s218_s1] sm:$0xff] }
   0x2   :  { %54 = vmatpush.bf16.msra.mxu0 %v145_v0  ;;  %v21_v2 = vld [vmem:[%s219_s0] sm:$0xff]  ;;  %v22_v3 = vld [vmem:[%s219_s0 + $0x8] sm:$0xff] }
   0x3   :  { %v27_v4 = vpack.c.bf16 %v22_v3, %v21_v2  ;;  %v147_v5 = vld [vmem:[%s222_s3 + $0x8] sm:$0xff]  ;;  %v146_v6 = vld [vmem:[%s222_s3] sm:$0xff] }
   0x4   :  { %110 = vmatpush.bf16.msra.mxu1 %v147_v5  ;;  %v148_v7 = vld [vmem:[%s220_s2] ss:$0 sm:$0xff] }
   0x5   :  { %v149_v31 = vld [vmem:[%s221_s4] ss:$0 sm:$0xff] }
   0x6   :  { %55 = vmatpush.bf16.msra.mxu0 %v144_v1 }
   0x8   :  { %111 = vmatpush.bf16.msra.mxu1 %v146_v6 }
   0x9   :  { %134 = vmatmul.msk.bf16.vlgmr.msra.gmra.mxu0 %vm44_vm0, %v27_v4 }
  0x86   :  { %v57_v8 = vpop.f32.mrf.mxu0 }
  0x87   :  { %v58_v9 = vadd.f32 %v148_v7, %v57_v8 }
  0x89   :  { %v64_v10 = vmul.f32 %v58_v9, %v58_v9  ;;  %v62_v25 = vmul.f32 0.5, %v58_v9 }
  0x8b   :  { %v66_v11 = vmul.f32 %v64_v10, %v58_v9 }
  0x8d   :  { %v68_v12 = vmul.f32 0.044715, %v66_v11 }
  0x8e   :  { %v59_v13 = vpop.f32.mrf.mxu0 }
  0x8f   :  { %v70_v14 = vadd.f32 %v68_v12, %v58_v9  ;;  %v60_v15 = vadd.f32 %v148_v7, %v59_v13 }
  0x91   :  { %v65_v16 = vmul.f32 %v60_v15, %v60_v15  ;;  %v72_v17 = vmul.f32 0.7978846, %v70_v14  ;;  %v63_v26 = vmul.f32 0.5, %v60_v15 }
  0x93   :  { %v67_v18 = vmul.f32 %v65_v16, %v60_v15  ;;  %150 = vtanh.f32 %v72_v17 }
  0x95   :  { %v69_v19 = vmul.f32 0.044715, %v67_v18 }
  0x97   :  { %v71_v20 = vadd.f32 %v69_v19, %v60_v15 }
  0x99   :  { %v73_v21 = vmul.f32 0.7978846, %v71_v20  ;;  %v151_v22 = vpop.eup %150 }
  0x9a   :  { %v76_v23 = vadd.f32 1.0, %v151_v22 }
  0x9b   :  { %152 = vtanh.f32 %v73_v21 }
  0x9c   :  { %v78_v28 = vmul.f32 %v76_v23, %v62_v25 }
  0xa1   :  { %v153_v24 = vpop.eup %152 }
  0xa2   :  { %v77_v27 = vadd.f32 1.0, %v153_v24 }
  0xa4   :  { %v79_v29 = vmul.f32 %v77_v27, %v63_v26 }
  0xa6   :  { %v84_v30 = vpack.c.bf16 %v79_v29, %v78_v28 }
  0xa8   :  { %143 = vmatmul.msk.bf16.vlgmr.msra.gmra.mxu1 %vm44_vm0, %v84_v30 }
 0x125   :  { %v113_v32 = vpop.f32.mrf.mxu1 }
 0x126   :  { %v114_v33 = vadd.f32 %v149_v31, %v113_v32 }
 0x128   :  { %v118_v34 = vadd.f32 %v114_v33, %v21_v2 }
 0x12a   :  { %120 = vst.msk [vmem:[%s223_s5] sm:$0xff] %vm44_vm0, %v118_v34 }
 0x12d   :  { %v115_v35 = vpop.f32.mrf.mxu1 }
 0x12e   :  { %v116_v36 = vadd.f32 %v149_v31, %v115_v35 }
 0x130   :  { %v119_v37 = vadd.f32 %v116_v36, %v22_v3 }
 0x132   :  { %121 = vst.msk [vmem:[%s223_s5 + $0x8] sm:$0xff] %vm44_vm0, %v119_v37 }

// kernel: _lambda_.5
= control target key start
LH: loop header
LB: loop body
LE: loop exit
PB: predicated region body
PF: predicated region fallthrough
CT: control target
= control target key end

     0   :  { %s903_s27 = smov 0   ;;  %s905_s28 = smov 0   ;;  %s1046_s0 = inlined_call_operand.vmem [shape: f32[2,8,32], index: 0, kind: input, shape index: {}]   ;;  %s1047_s1 = inlined_call_operand.vmem [shape: f32[1,32], index: 1, kind: input, shape index: {}]   ;;  %s1048_s2 = inlined_call_operand.vmem [shape: f32[1,32], index: 2, kind: input, shape index: {}]   ;;  %s1049_s3 = inlined_call_operand.vmem [shape: bf16[32,192], index: 3, kind: input, shape index: {}]   ;;  %s1050_s4 = inlined_call_operand.vmem [shape: f32[1,192], index: 4, kind: input, shape index: {}]   ;;  %s1051_s5 = inlined_call_operand.vmem [shape: bf16[64,32], index: 5, kind: input, shape index: {}]   ;;  %s1052_s6 = inlined_call_operand.vmem [shape: f32[1,32], index: 6, kind: input, shape index: {}]   ;;  %s1053_s7 = inlined_call_operand.vmem [shape: f32[2,8,32], index: 7, kind: output, shape index: {0}]   ;;  %s1054_s8 = inlined_call_operand.vmem [shape: f32[2,2,8,64], index: 8, kind: output, shape index: {1}]  }
   0x1   :  { %s907_s29 = smov 0  }
   0x2 LB: > { %s916_s30 = sadd.s32 4294967295, %s851_s29   ;;  %s918_s9 = sadd.s32 1, %s851_s29   ;;  %s851_s29 = sphi %s907_s29, %s1058_s29   ;;  %s847_s28 = sphi %s905_s28, %s1057_s28   ;;  %s843_s27 = sphi %s903_s27, %s1056_s27  }
   0x3   : > { %s201_s10 = ssub.s32 %s851_s29, %s918_s9  ;;  %s204_s11 = sadd.s32 1, %s847_s28 }
   0x4   : > { %p202_p0 = scmp.eq.s32.totalorder %s201_s10, 0  ;;  %p214_p1 = scmp.ne.s32.totalorder %s847_s28, %s843_s27 }
   0x5   : > { %p215_p2 = scmp.eq.s32.totalorder %s916_s30, 1  ;;  %p729_p3 = scmp.ge.s32.totalorder %s851_s29, 1 }
   0x6   : > { %s926_s12 = scalar_select %p202_p0, %s847_s28, %s204_s11  }
   0x7   : > { %p928_p4 = por %p215_p2, %p214_p1  ;;  %p264_p5 = scmp.lt.s32.totalorder %s851_s29, 3 }
   0x9   : > { %p265_p6 = pnand %p729_p3, %p264_p5 }
   0xa   : > { %p300_p7 = scmp.lt.s32.totalorder (!%p265_p6), %s916_s30, 1  ;;  %s297_s29 = sand.u32 (!%p265_p6), 1, %s843_s27  }
   0xb   : > { %268 = sbr.rel (%p265_p6) target bundleno = 1694 (0x69e), region = 48  ;;  %s730_s10 = sshll.u32 (!%p265_p6), %s297_s29, 4 }
   0xc   : > { %s984_s11 = scalar_lea.vmem (!%p265_p6), [#allocation2], %s730_s10  ;;  %s854_s16 = smov (!%p265_p6), 96  }
   0xd   : > { %s855_s17 = smov (!%p265_p6), 64   ;;  %s857_s27 = smov (!%p265_p6), 32  }
  0x10   : > { %s934_s14 = scalar_select %p300_p7, %s916_s30, 1  ;;  %vm312_vm0 = vcmask 261120   ;;  %v853_v2 = vmov 32.0   ;;  %v743_v14 = vld [vmem:[%s1049_s3 + $0x10] sm:$0xf]  ;;  %vm572_vm5 = vcmask 523264   ;;  %v410_v56 = vlaneseq }
  0x11   : > { %817 = vrcp.f32 %v853_v2  ;;  %v780_v15 = vld [vmem:[%s1049_s3 + $0x14] sm:$0xf0]  ;;  %v779_v16 = vld [vmem:[%s1049_s3 + $0x14] sm:$0xf]  ;;  %v745_v18 = vld [vmem:[%s1049_s3 + $0x18] sm:$0xf0] }
  0x12   : > { %s731_s15 = sshll.u32 %s934_s14, 3  ;;  %v744_v17 = vor.u32 %v780_v15, %v743_v14  ;;  %v735_v19 = vld [vmem:[%s1049_s3] sm:$0xf]  ;;  %v778_v20 = vld [vmem:[%s1049_s3 + $0x4] sm:$0xf0]  ;;  %v748_v21 = vor.u32 %v779_v16, %v745_v18  ;;  %vm456_vm6 = vcmask 1043456  }
  0x13   : > { %s303_s18 = scalar_lea.vmem %s1046_s0, %s731_s15  ;;  %v777_v22 = vld [vmem:[%s1049_s3 + $0x4] sm:$0xf]  ;;  %v737_v23 = vld [vmem:[%s1049_s3 + $0x8] sm:$0xf0]  ;;  %v736_v24 = vor.u32 %v778_v20, %v735_v19  ;;  %v814_v35 = vld [vmem:[%s1047_s1] ss:$0 sm:$0xff] }
  0x14   : > { %v942_v0 = vld [vmem:[%s303_s18] sm:$0xff]  ;;  %390 = vmatpush.bf16.msra.mxu0 %v744_v17  ;;  %403 = vmatpush.bf16.msra.mxu1 %v748_v21  ;;  %v740_v25 = vor.u32 %v777_v22, %v737_v23  ;;  %v411_v57 = vshrl.u32 %v410_v56, 7  ;;  %v413_v58 = vand.u32 127, %v410_v56  ;;  %v856_v59 = vmov 0.0  }
  0x15   : > { %v313_v1 = vsel %vm312_vm0, %v942_v0, 0.0  ;;  %v815_v38 = vld [vmem:[%s1048_s2] ss:$0 sm:$0xff]  ;;  %vm439_vm8 = vcmask 64512  }
  0x16   : > { %314 = vadd.xlane.f32.xlu0 %v313_v1  ;;  %v355_v42 = vld [vmem:[%s1050_s4] sm:$0x3]  ;;  %vm414_vm7 = vcmp.gt.s32.totalorder %v413_v58, %v411_v57 }
  0x17   : > { %v818_v3 = vpop.eup %817  ;;  %v357_v43 = vperm.slane %v355_v42, 0  ;;  %v358_v44 = vperm.slane %v355_v42, 1  ;;  %v415_v60 = vsel %vm414_vm7, -inf, %v856_v59 }
  0x18   : > { %v317_v4 = vmul.f32 32.0, %v818_v3  ;;  %vm321_vm1 = vweird.f32 %v818_v3  ;;  %391 = vmatpush.bf16.msra.mxu0 %v736_v24  ;;  %404 = vmatpush.bf16.msra.mxu1 %v740_v25 }
  0x1a   : > { %v318_v5 = vsub.f32 1.0, %v317_v4 }
  0x1c   : > { %v319_v6 = vmul.f32 %v818_v3, %v318_v5 }
  0x1e   : > { %v320_v7 = vadd.f32 %v818_v3, %v319_v6 }
  0x20   : > { %v322_v8 = vsel %vm321_vm1, %v818_v3, %v320_v7 }
  0x89   : > { %v315_v9 = vpop.xlane.xlu0 %314 }
  0x8a   : > { %v323_v10 = vmul.f32 %v322_v8, %v315_v9 }
  0x8c   : > { %v324_v11 = vsub.f32 %v942_v0, %v323_v10 }
  0x8e   : > { %v325_v12 = vmul.f32 %v324_v11, %v324_v11 }
  0x90   : > { %v326_v13 = vsel %vm312_vm0, %v325_v12, 0.0 }
  0x91   : > { %327 = vadd.xlane.f32.xlu0 %v326_v13 }
 0x104   : > { %v328_v26 = vpop.xlane.xlu0 %327 }
 0x105   : > { %v329_v27 = vmul.f32 %v328_v26, %v322_v8 }
 0x107   : > { %v330_v28 = vadd.f32 1e-05, %v329_v27 }
 0x109   : > { %819 = vrsqrt.f32 %v330_v28  ;;  %vm337_vm3 = vweird.f32 %v330_v28 }
 0x10f   : > { %v820_v29 = vpop.eup %819 }
 0x110   : > { %v332_v30 = vmul.f32 %v820_v29, %v330_v28  ;;  %vm338_vm2 = vweird.f32 %v820_v29 }
 0x111   : > { %vm339_vm4 = vmor %vm337_vm3, %vm338_vm2 }
 0x112   : > { %v333_v31 = vmul.f32 %v820_v29, %v332_v30 }
 0x114   : > { %v334_v32 = vmul.f32 0.5, %v333_v31 }
 0x116   : > { %v335_v33 = vsub.f32 1.5, %v334_v32  ;;  %v784_v32 = vld [vmem:[%s1051_s5 + $0x18] sm:$0xff] }
 0x117   : > { %580 = vmatpush.bf16.msrb.mxu1 %v784_v32 }
 0x118   : > { %v336_v34 = vmul.f32 %v820_v29, %v335_v33  ;;  %v783_v33 = vld [vmem:[%s1051_s5 + $0x10] sm:$0xff] }
 0x11a   : > { %v340_v36 = vsel %vm339_vm4, %v820_v29, %v336_v34  ;;  %v782_v34 = vld [vmem:[%s1051_s5 + $0x8] sm:$0xff] }
 0x11b   : > { %v341_v37 = vmul.f32 %v340_v36, %v324_v11  ;;  %581 = vmatpush.bf16.msrb.mxu1 %v783_v33 }
 0x11d   : > { %v345_v39 = vmul.f32 %v814_v35, %v341_v37  ;;  %v781_v35 = vld [vmem:[%s1051_s5] sm:$0xff] }
 0x11f   : > { %v349_v40 = vadd.f32 %v815_v38, %v345_v39  ;;  %582 = vmatpush.bf16.msrb.mxu1 %v782_v34 }
 0x121   : > { %v354_v41 = vpack.c.bf16 %v349_v40, %v349_v40 }
 0x123   : > { %749 = vmatmul.msk.bf16.vlgmr.msra.gmra.mxu0 %vm312_vm0, %v354_v41  ;;  %750 = vmatmul.msk.bf16.vlgmr.msra.gmra.mxu1 %vm312_vm0, %v354_v41  ;;  %v816_v41 = vld [vmem:[%s1052_s6] ss:$0 sm:$0xff] }
 0x124   : > { %583 = vmatpush.bf16.msrb.mxu1 %v781_v35 }
 0x1a0   : > { %v393_v45 = vpop.f32.mrf.mxu0  ;;  %v406_v46 = vpop.f32.mrf.mxu1 }
 0x1a1   : > { %v394_v47 = vadd.f32 %v393_v45, %v357_v43  ;;  %v407_v48 = vadd.f32 %v406_v46, %v358_v44 }
 0x1a3   : > { %v416_v49 = vpack.c.bf16 %v394_v47, %v394_v47  ;;  %v452_v50 = vpack.c.bf16 %v407_v48, %v407_v48  ;;  %772 = vst.msk [vmem:[%s984_s11 + $0x8] sm:$0xff] %vm572_vm5, %v407_v48 }
 0x1a5   : > { %473 = vrot.lane.b32.xlu0 %v416_v49, %s854_s16  ;;  %418 = vrot.lane.b32.xlu1 %v416_v49, %s855_s17  ;;  %v458_v51 = vsel %vm456_vm6, %v452_v50, 0 }
 0x1a6   : > { %467 = vmatpush.bf16.msra.mxu3 %v458_v51 }
 0x1a8   : > { %v395_v52 = vpop.f32.mrf.mxu0  ;;  %v408_v53 = vpop.f32.mrf.mxu1 }
 0x217   : > { %v419_v54 = vpop.permute.xlu1 %418  ;;  %v474_v16 = vpop.permute.xlu0 %473 }
 0x218   : > { %v424_v55 = vsel %vm312_vm0, %v419_v54, 0 }
 0x219   : > { %433 = vmatpush.bf16.xpose.msra.mxu2 %v424_v55 }
 0x220   : > { %751 = vmatmul.msk.bf16.vlgmr.msra.gmra.mxu2 %vm312_vm0, %v416_v49 }
 0x2a3   : > { %v435_v61 = vpop.f32.mrf.mxu2 }
 0x2a4   : > { %v436_v62 = vadd.f32 %v435_v61, %v415_v60 }
 0x2a6   : > { %v440_v63 = vsel %vm439_vm8, %v436_v62, -inf }
 0x2a7   : > { %441 = vmax.xlane.f32.xlu1 %v440_v63 }
 0x2ab   : > { %v437_v1 = vpop.f32.mrf.mxu2 }
 0x2c0   : > { %509 = vrot.lane.b32.xlu1 %v452_v50, %s854_s16 }
 0x2c8   : > { %592 = vrot.lane.b32.xlu1 %v394_v47, %s855_s17  ;;  %s307_s17 = scalar_lea.vmem %s1053_s7, %s731_s15  ;;  %v646_v47 = vld [vmem:[%s984_s11 + $0x8] sm:$0xff] (%p928_p4) }
 0x31a   : > { %v442_v2 = vpop.xlane.xlu1 %441 }
 0x31b   : > { %v443_v3 = vsub.f32 %v436_v62, %v442_v2 }
 0x31d   : > { %v444_v4 = vmul.f32 1.442695, %v443_v3 }
 0x31f   : > { %821 = vpow2.f32 %v444_v4 }
 0x325   : > { %v822_v5 = vpop.eup %821 }
 0x326   : > { %v446_v6 = vsel %vm439_vm8, %v822_v5, 0.0 }
 0x327   : > { %447 = vadd.xlane.f32.xlu2 %v446_v6 }
 0x332   : > { %v510_v7 = vpop.permute.xlu1 %509 }
 0x333   : > { %v515_v8 = vsel %vm456_vm6, %v510_v7, 0 }
 0x334   : > { %524 = vmatpush.bf16.msrb.mxu0 %v515_v8 }
 0x33a   : > { %v593_v9 = vpop.permute.xlu1 %592 }
 0x33b   : > { %595 = vst.msk [vmem:[%s984_s11] sm:$0xff] %vm572_vm5, %v593_v9 }
 0x33f   : > { %475 = vrot.lane.b32.xlu2 %v416_v49, %s857_s27 }
 0x342   : > { %v644_v46 = vld [vmem:[%s984_s11] sm:$0xff] (%p928_p4) }
 0x39a   : > { %v448_v10 = vpop.xlane.xlu2 %447 }
 0x39b   : > { %823 = vrcp.f32 %v448_v10 }
 0x3a1   : > { %v824_v11 = vpop.eup %823 }
 0x3a2   : > { %v476_v12 = vpop.permute.xlu2 %475  ;;  %v450_v13 = vmul.f32 %v824_v11, %v822_v5 }
 0x3a3   : > { %v481_v14 = vsel %vm312_vm0, %v476_v12, 0 }
 0x3a4   : > { %490 = vmatpush.bf16.xpose.msrb.mxu3 %v481_v14  ;;  %v451_v15 = vpack.c.bf16 %v450_v13, %v450_v13 }
 0x3a6   : > { %752 = vmatmul.msk.bf16.vlgmr.msra.gmra.mxu3 %vm439_vm8, %v451_v15 }
 0x3b6   : > { %753 = vmatmul.msk.bf16.vlgmr.msrb.gmra.mxu3 %vm312_vm0, %v474_v16 }
 0x429   : > { %v469_v17 = vpop.f32.mrf.mxu3 }
 0x431   : > { %v471_v18 = vpop.f32.mrf.mxu3 }
 0x439   : > { %v492_v19 = vpop.f32.mrf.mxu3 }
 0x43a   : > { %v493_v20 = vadd.f32 %v492_v19, %v415_v60 }
 0x43c   : > { %v496_v21 = vsel %vm439_vm8, %v493_v20, -inf }
 0x43d   : > { %497 = vmax.xlane.f32.xlu2 %v496_v21 }
 0x441   : > { %v494_v22 = vpop.f32.mrf.mxu3 }
 0x4b0   : > { %v498_v23 = vpop.xlane.xlu2 %497 }
 0x4b1   : > { %v499_v24 = vsub.f32 %v493_v20, %v498_v23 }
 0x4b3   : > { %v500_v25 = vmul.f32 1.442695, %v499_v24 }
 0x4b5   : > { %825 = vpow2.f32 %v500_v25 }
 0x4bb   : > { %v826_v26 = vpop.eup %825 }
 0x4bc   : > { %v502_v27 = vsel %vm439_vm8, %v826_v26, 0.0 }
 0x4bd   : > { %503 = vadd.xlane.f32.xlu0 %v502_v27 }
 0x530   : > { %v504_v28 = vpop.xlane.xlu0 %503 }
 0x531   : > { %827 = vrcp.f32 %v504_v28 }
 0x537   : > { %v828_v29 = vpop.eup %827 }
 0x538   : > { %v506_v30 = vmul.f32 %v828_v29, %v826_v26 }
 0x53a   : > { %v507_v31 = vpack.c.bf16 %v506_v30, %v506_v30 }
 0x53c   : > { %754 = vmatmul.msk.bf16.vlgmr.msrb.gmra.mxu0 %vm439_vm8, %v507_v31 }
 0x5b9   : > { %v526_v36 = vpop.f32.mrf.mxu0 }
 0x5ba   : > { %531 = vrot.lane.b32.xlu2 %v526_v36, %s857_s27  ;;  %s774_s27 = sshll.u32 (%p928_p4), %s916_s30, 3 }
 0x5bb   : > { %s613_s19 = scalar_lea.vmem (%p928_p4), %s1054_s8, %s774_s27 }
 0x5bc   : > { %645 = vst [vmem:[%s613_s19] sm:$0xff] (%p928_p4), %v644_v46 }
 0x5bd   : > { %647 = vst [vmem:[%s613_s19 + $0x10] sm:$0xff] (%p928_p4), %v646_v47 }
 0x5c1   : > { %v528_v37 = vpop.f32.mrf.mxu0 }
 0x614   : > { %v532_v38 = vpop.permute.xlu2 %531 }
 0x615   : > { %v534_v39 = vsel %vm312_vm0, %v469_v17, %v532_v38 }
 0x616   : > { %v543_v40 = vpack.c.bf16 %v534_v39, %v534_v39 }
 0x618   : > { %771 = vmatmul.msk.bf16.vlgmr.msrb.gmra.mxu1 %vm572_vm5, %v543_v40 }
 0x695   : > { %v585_v42 = vpop.f32.mrf.mxu1 }
 0x696   : > { %v586_v43 = vadd.f32 %v816_v41, %v585_v42 }
 0x698   : > { %v589_v44 = vadd.f32 %v586_v43, %v942_v0 }
 0x699   : > { %611 = sbr.rel (!%p928_p4) target bundleno = 1694 (0x69e), region = 56 }
 0x69a   : > { %590 = vst.msk [vmem:[%s307_s17] sm:$0xff] %vm312_vm0, %v589_v44 }
 0x69d   : > { %v587_v45 = vpop.f32.mrf.mxu1 }
 0x69e PF: > { %p16_p8 = scmp.ge.s32.totalorder %s918_s9, 4   ;;  %s1056_s27 = smov %s847_s28 }
 0x69f   : > { %s1057_s28 = smov %s926_s12  ;;  %s1058_s29 = smov %s918_s9 }
 0x6a0   :  { %18 = sbr.rel (!%p16_p8) target bundleno = 2 (0x2), region = 129 }

</bundles_post_ra>
